<compile_context>
chip_gen: v6e
topology: v6e:2x2x1
jax: 0.10.0
libtpu: 0.0.40
codegen_flags: <defaults>
</compile_context>

<pallas_src>
import functools

import jax
import jax.numpy as jnp
from jax import lax
from jax.experimental import pallas as pl
from jax.experimental.pallas import tpu as pltpu


def _attention_body(q_ref, k_ref, v_ref, m_ref, o_ref, *, scaling, mask_heads):
    """One (batch, q-block) grid step; static loop over heads.

    q_ref/o_ref : (1, block_q, H, D)      k_ref/v_ref : (1, S, H, D)
    m_ref       : (1, mask_heads, block_q, S) pre-scaled f32 mask, or None
    """
    num_heads = q_ref.shape[2]
    for h in range(num_heads):                         # static, unrolled
        q_h = q_ref[0, :, h, :] * scaling              # (block_q, D), native dtype
        k_h = k_ref[0, :, h, :]                        # (S, D)
        v_h = v_ref[0, :, h, :]                        # (S, D)

        # scores = Q @ K^T: contract the last dim of both operands (no k.T).
        s = lax.dot_general(q_h, k_h, (((1,), (1,)), ((), ())),
                            preferred_element_type=jnp.float32)   # (block_q, S)
        if m_ref is not None:
            s = s + m_ref[0, 0 if mask_heads == 1 else h]          # head-broadcast

        # Numerically stable softmax in f32; approximate reciprocal goes to the EUP.
        s = s - jnp.max(s, axis=-1, keepdims=True)
        p = jnp.exp(s)
        p = p * pl.reciprocal(jnp.sum(p, axis=-1, keepdims=True), approx=True)

        # TODO(synk): training-mode dropout on the attention probabilities
        # (pltpu.prng_random_bits mask) is not implemented; eval / p_dropout==0 is identity.

        y = jnp.dot(p.astype(v_h.dtype), v_h,
                    preferred_element_type=jnp.float32)            # (block_q, D)
        o_ref[0, :, h, :] = y.astype(o_ref.dtype)


def _attention_kernel_mask(q_ref, k_ref, v_ref, m_ref, o_ref, *, scaling, mask_heads):
    _attention_body(q_ref, k_ref, v_ref, m_ref, o_ref,
                    scaling=scaling, mask_heads=mask_heads)


def _attention_kernel_nomask(q_ref, k_ref, v_ref, o_ref, *, scaling):
    _attention_body(q_ref, k_ref, v_ref, None, o_ref, scaling=scaling, mask_heads=1)


def vanilla_attention(q, k, v, attn_mask=None, *, d_head=None, p_dropout=0.0,
                      block_q=512):
    """q, k, v: [n, seq, heads, d_head] (PyTorch 'niae' layout). Returns same layout."""
    assert q.ndim == 4 and k.ndim == 4 and v.ndim == 4
    N, S, H, D = q.shape
    assert k.shape == (N, S, H, D) and v.shape == (N, S, H, D)
    if d_head is None:
        d_head = D
    scaling = float(d_head) ** (-0.5)

    block_q = min(block_q, S)
    grid = (N, pl.cdiv(S, block_q))

    # Layout transposes are absorbed into the BlockSpecs: blocks keep the 'niae'
    # layout and the last two block dims (H, D) equal the full array dims.
    qo_spec = pl.BlockSpec((1, block_q, H, D), lambda n, qi: (n, qi, 0, 0))
    kv_spec = pl.BlockSpec((1, S, H, D), lambda n, qi: (n, 0, 0, 0))
    out_shape = jax.ShapeDtypeStruct((N, S, H, D), q.dtype)
    compiler_params = pltpu.CompilerParams(
        dimension_semantics=("parallel", "parallel"))

    if attn_mask is None:
        kernel = functools.partial(_attention_kernel_nomask, scaling=scaling)
        return pl.pallas_call(
            kernel,
            out_shape=out_shape,
            grid_spec=pltpu.PrefetchScalarGridSpec(
                num_scalar_prefetch=0, grid=grid,
                in_specs=[qo_spec, kv_spec, kv_spec],
                out_specs=qo_spec),
            compiler_params=compiler_params,
        )(q, k, v)

    # Canonicalize the mask to (Nm, Hm, S, S) with Nm in {1, N}, Hm in {1, H}.
    # Size-1 batch/head dims are broadcast *logically* via the index_map — the mask is
    # never expanded to an (N, H, S, S) HBM tensor.
    m = jnp.asarray(attn_mask)
    if m.ndim > 4:
        raise ValueError("attn_mask must have at most 4 dimensions")
    m = m.reshape((1,) * (4 - m.ndim) + m.shape)
    Nm, Hm = m.shape[0], m.shape[1]
    if Nm not in (1, N) or Hm not in (1, H):
        raise ValueError("attn_mask batch/head dims must be 1 or match q")
    # softmax(scaling*(s + m)) == softmax(scaling*s + scaling*m): pre-scale the
    # (small) mask once; `scaling` itself is folded into q inside the kernel.
    m = jnp.broadcast_to(m, (Nm, Hm, S, S)).astype(jnp.float32) * scaling

    if Nm == N:
        m_index = lambda n, qi: (n, 0, qi, 0)
    else:
        m_index = lambda n, qi: (0, 0, qi, 0)      # constant block -> stays resident
    m_spec = pl.BlockSpec((1, Hm, block_q, S), m_index)

    kernel = functools.partial(_attention_kernel_mask, scaling=scaling, mask_heads=Hm)
    return pl.pallas_call(
        kernel,
        out_shape=out_shape,
        grid_spec=pltpu.PrefetchScalarGridSpec(
            num_scalar_prefetch=0, grid=grid,
            in_specs=[qo_spec, kv_spec, kv_spec, m_spec],
            out_specs=qo_spec),
        compiler_params=compiler_params,
    )(q, k, v, m)


def _reference(q, k, v, attn_mask, scaling):
    attn = jnp.einsum('niae,njae->naij', q, k)
    if attn_mask is not None:
        attn = attn + attn_mask
    attn = jax.nn.softmax(scaling * attn, axis=-1)
    return jnp.einsum('naij,njae->niae', attn, v)


if __name__ == "__main__":
    # Small shapes: batch=2, seq=8, heads=4, d_head=32
    N, S, H, D = 2, 8, 4, 32
    key = jax.random.PRNGKey(0)
    kq, kk, kv, km = jax.random.split(key, 4)
    q = jax.random.normal(kq, (N, S, H, D), dtype=jnp.float32)
    k = jax.random.normal(kk, (N, S, H, D), dtype=jnp.float32)
    v = jax.random.normal(kv, (N, S, H, D), dtype=jnp.float32)
    # Shared (S, S) additive mask — broadcast over (batch, head) via the BlockSpec,
    # never materialized to (N, H, S, S).
    attn_mask = 0.1 * jax.random.normal(km, (S, S), dtype=jnp.float32)

    scaling = float(D) ** (-0.5)

    # Masked path.
    y = vanilla_attention(q, k, v, attn_mask, d_head=D, p_dropout=0.0)
    y = jax.block_until_ready(y)
    assert y.shape == (N, S, H, D)
    y_ref = _reference(q, k, v, attn_mask, scaling)
    # Tolerance accounts for the EUP approximate reciprocal in the softmax epilogue.
    assert jnp.allclose(y, y_ref, atol=2e-3, rtol=2e-3), "masked path mismatch"

    # Mask-free path (separate kernel variant, no zero-mask DMA).
    y2 = vanilla_attention(q, k, v, None, d_head=D, p_dropout=0.0)
    y2 = jax.block_until_ready(y2)
    y2_ref = _reference(q, k, v, None, scaling)
    assert jnp.allclose(y2, y2_ref, atol=2e-3, rtol=2e-3), "mask-free path mismatch"

    print("KERNEL_OK")
</pallas_src>

<mosaic_0001>
module attributes {stable_mosaic.version = 11 : i64} {
  func.func @_attention_kernel_mask(%arg0: i32, %arg1: i32, %arg2: memref<1x8x4x32xf32, #tpu.memory_space<vmem>>, %arg3: memref<1x8x4x32xf32, #tpu.memory_space<vmem>>, %arg4: memref<1x8x4x32xf32, #tpu.memory_space<vmem>>, %arg5: memref<1x1x8x8xf32, #tpu.memory_space<vmem>>, %arg6: memref<1x8x4x32xf32, #tpu.memory_space<vmem>>) attributes {dimension_semantics = [#tpu.dimension_semantics<parallel>, #tpu.dimension_semantics<parallel>], iteration_bounds = array<i64: 2, 1>, scalar_prefetch = 0 : i64, scratch_operands = 0 : i64, tpu.core_type = #tpu.core_type<tc>, window_params = [{transform_indices = @transform_0, window_bounds = array<i64: 1, 8, 4, 32>}, {transform_indices = @transform_1, window_bounds = array<i64: 1, 8, 4, 32>}, {transform_indices = @transform_2, window_bounds = array<i64: 1, 8, 4, 32>}, {transform_indices = @transform_3, window_bounds = array<i64: 1, 1, 8, 8>}, {transform_indices = @transform_4, window_bounds = array<i64: 1, 8, 4, 32>}]} {
    %c0 = arith.constant 0 : index
    %c0_0 = arith.constant 0 : index
    %c0_1 = arith.constant 0 : index
    %c0_2 = arith.constant 0 : index
    %0 = vector.load %arg2[%c0, %c0_0, %c0_1, %c0_2] : memref<1x8x4x32xf32, #tpu.memory_space<vmem>>, vector<1x8x1x32xf32>
    %1 = vector.shape_cast %0 : vector<1x8x1x32xf32> to vector<8x32xf32>
    %cst = arith.constant 0.176776692 : f32
    %2 = vector.broadcast %cst : f32 to vector<8x32xf32>
    %3 = arith.mulf %1, %2 : vector<8x32xf32>
    %c0_3 = arith.constant 0 : index
    %c0_4 = arith.constant 0 : index
    %c0_5 = arith.constant 0 : index
    %c0_6 = arith.constant 0 : index
    %4 = vector.load %arg3[%c0_3, %c0_4, %c0_5, %c0_6] : memref<1x8x4x32xf32, #tpu.memory_space<vmem>>, vector<1x8x1x32xf32>
    %5 = vector.shape_cast %4 : vector<1x8x1x32xf32> to vector<8x32xf32>
    %c0_7 = arith.constant 0 : index
    %c0_8 = arith.constant 0 : index
    %c0_9 = arith.constant 0 : index
    %c0_10 = arith.constant 0 : index
    %6 = vector.load %arg4[%c0_7, %c0_8, %c0_9, %c0_10] : memref<1x8x4x32xf32, #tpu.memory_space<vmem>>, vector<1x8x1x32xf32>
    %7 = vector.shape_cast %6 : vector<1x8x1x32xf32> to vector<8x32xf32>
    %cst_11 = arith.constant dense<0.000000e+00> : vector<8x8xf32>
    %8 = tpu.matmul %3, %5, %cst_11 {dimension_numbers = #tpu.dot_dimension_numbers<[1], [1], [0], [0], [0, 0, 1, 0], [], []>} : vector<8x32xf32>, vector<8x32xf32>, vector<8x8xf32> -> vector<8x8xf32>
    %c0_12 = arith.constant 0 : index
    %c0_13 = arith.constant 0 : index
    %c0_14 = arith.constant 0 : index
    %c0_15 = arith.constant 0 : index
    %9 = vector.load %arg5[%c0_12, %c0_13, %c0_14, %c0_15] : memref<1x1x8x8xf32, #tpu.memory_space<vmem>>, vector<1x1x8x8xf32>
    %10 = vector.shape_cast %9 : vector<1x1x8x8xf32> to vector<8x8xf32>
    %11 = arith.addf %8, %10 : vector<8x8xf32>
    %cst_16 = arith.constant dense<0xFF800000> : vector<8xf32>
    %12 = vector.multi_reduction <maximumf>, %11, %cst_16 [1] : vector<8x8xf32> to vector<8xf32>
    %13 = vector.shape_cast %12 : vector<8xf32> to vector<8x1xf32>
    %14 = vector.broadcast %13 : vector<8x1xf32> to vector<8x8xf32>
    %15 = arith.subf %11, %14 : vector<8x8xf32>
    %16 = math.exp %15 : vector<8x8xf32>
    %cst_17 = arith.constant dense<0.000000e+00> : vector<8xf32>
    %17 = vector.multi_reduction <add>, %16, %cst_17 [1] : vector<8x8xf32> to vector<8xf32>
    %18 = vector.shape_cast %17 : vector<8xf32> to vector<8x1xf32>
    %19 = tpu.reciprocal %18 {approx = true} : vector<8x1xf32> -> vector<8x1xf32>
    %20 = vector.broadcast %19 : vector<8x1xf32> to vector<8x8xf32>
    %21 = arith.mulf %16, %20 : vector<8x8xf32>
    %cst_18 = arith.constant dense<0.000000e+00> : vector<8x32xf32>
    %22 = tpu.matmul %21, %7, %cst_18 {dimension_numbers = #tpu.dot_dimension_numbers<[1], [0], [0], [1], [0, 0, 1, 1], [], []>} : vector<8x8xf32>, vector<8x32xf32>, vector<8x32xf32> -> vector<8x32xf32>
    %c0_19 = arith.constant 0 : index
    %c0_20 = arith.constant 0 : index
    %c0_21 = arith.constant 0 : index
    %c0_22 = arith.constant 0 : index
    %23 = vector.load %arg6[%c0_19, %c0_20, %c0_21, %c0_22] : memref<1x8x4x32xf32, #tpu.memory_space<vmem>>, vector<1x8x1x32xf32>
    %24 = vector.shape_cast %23 : vector<1x8x1x32xf32> to vector<8x32xf32>
    %25 = vector.shape_cast %22 : vector<8x32xf32> to vector<1x8x1x32xf32>
    tpu.vector_store %arg6[%c0_19, %c0_20, %c0_21, %c0_22], %25 {strides = array<i32>} : memref<1x8x4x32xf32, #tpu.memory_space<vmem>>, vector<1x8x1x32xf32>,
    %c0_23 = arith.constant 0 : index
    %c0_24 = arith.constant 0 : index
    %c1 = arith.constant 1 : index
    %c0_25 = arith.constant 0 : index
    %26 = vector.load %arg2[%c0_23, %c0_24, %c1, %c0_25] : memref<1x8x4x32xf32, #tpu.memory_space<vmem>>, vector<1x8x1x32xf32>
    %27 = vector.shape_cast %26 : vector<1x8x1x32xf32> to vector<8x32xf32>
    %cst_26 = arith.constant 0.176776692 : f32
    %28 = vector.broadcast %cst_26 : f32 to vector<8x32xf32>
    %29 = arith.mulf %27, %28 : vector<8x32xf32>
    %c0_27 = arith.constant 0 : index
    %c0_28 = arith.constant 0 : index
    %c1_29 = arith.constant 1 : index
    %c0_30 = arith.constant 0 : index
    %30 = vector.load %arg3[%c0_27, %c0_28, %c1_29, %c0_30] : memref<1x8x4x32xf32, #tpu.memory_space<vmem>>, vector<1x8x1x32xf32>
    %31 = vector.shape_cast %30 : vector<1x8x1x32xf32> to vector<8x32xf32>
    %c0_31 = arith.constant 0 : index
    %c0_32 = arith.constant 0 : index
    %c1_33 = arith.constant 1 : index
    %c0_34 = arith.constant 0 : index
    %32 = vector.load %arg4[%c0_31, %c0_32, %c1_33, %c0_34] : memref<1x8x4x32xf32, #tpu.memory_space<vmem>>, vector<1x8x1x32xf32>
    %33 = vector.shape_cast %32 : vector<1x8x1x32xf32> to vector<8x32xf32>
    %cst_35 = arith.constant dense<0.000000e+00> : vector<8x8xf32>
    %34 = tpu.matmul %29, %31, %cst_35 {dimension_numbers = #tpu.dot_dimension_numbers<[1], [1], [0], [0], [0, 0, 1, 0], [], []>} : vector<8x32xf32>, vector<8x32xf32>, vector<8x8xf32> -> vector<8x8xf32>
    %c0_36 = arith.constant 0 : index
    %c0_37 = arith.constant 0 : index
    %c0_38 = arith.constant 0 : index
    %c0_39 = arith.constant 0 : index
    %35 = vector.load %arg5[%c0_36, %c0_37, %c0_38, %c0_39] : memref<1x1x8x8xf32, #tpu.memory_space<vmem>>, vector<1x1x8x8xf32>
    %36 = vector.shape_cast %35 : vector<1x1x8x8xf32> to vector<8x8xf32>
    %37 = arith.addf %34, %36 : vector<8x8xf32>
    %cst_40 = arith.constant dense<0xFF800000> : vector<8xf32>
    %38 = vector.multi_reduction <maximumf>, %37, %cst_40 [1] : vector<8x8xf32> to vector<8xf32>
    %39 = vector.shape_cast %38 : vector<8xf32> to vector<8x1xf32>
    %40 = vector.broadcast %39 : vector<8x1xf32> to vector<8x8xf32>
    %41 = arith.subf %37, %40 : vector<8x8xf32>
    %42 = math.exp %41 : vector<8x8xf32>
    %cst_41 = arith.constant dense<0.000000e+00> : vector<8xf32>
    %43 = vector.multi_reduction <add>, %42, %cst_41 [1] : vector<8x8xf32> to vector<8xf32>
    %44 = vector.shape_cast %43 : vector<8xf32> to vector<8x1xf32>
    %45 = tpu.reciprocal %44 {approx = true} : vector<8x1xf32> -> vector<8x1xf32>
    %46 = vector.broadcast %45 : vector<8x1xf32> to vector<8x8xf32>
    %47 = arith.mulf %42, %46 : vector<8x8xf32>
    %cst_42 = arith.constant dense<0.000000e+00> : vector<8x32xf32>
    %48 = tpu.matmul %47, %33, %cst_42 {dimension_numbers = #tpu.dot_dimension_numbers<[1], [0], [0], [1], [0, 0, 1, 1], [], []>} : vector<8x8xf32>, vector<8x32xf32>, vector<8x32xf32> -> vector<8x32xf32>
    %c0_43 = arith.constant 0 : index
    %c0_44 = arith.constant 0 : index
    %c1_45 = arith.constant 1 : index
    %c0_46 = arith.constant 0 : index
    %49 = vector.load %arg6[%c0_43, %c0_44, %c1_45, %c0_46] : memref<1x8x4x32xf32, #tpu.memory_space<vmem>>, vector<1x8x1x32xf32>
    %50 = vector.shape_cast %49 : vector<1x8x1x32xf32> to vector<8x32xf32>
    %51 = vector.shape_cast %48 : vector<8x32xf32> to vector<1x8x1x32xf32>
    tpu.vector_store %arg6[%c0_43, %c0_44, %c1_45, %c0_46], %51 {strides = array<i32>} : memref<1x8x4x32xf32, #tpu.memory_space<vmem>>, vector<1x8x1x32xf32>,
    %c0_47 = arith.constant 0 : index
    %c0_48 = arith.constant 0 : index
    %c2 = arith.constant 2 : index
    %c0_49 = arith.constant 0 : index
    %52 = vector.load %arg2[%c0_47, %c0_48, %c2, %c0_49] : memref<1x8x4x32xf32, #tpu.memory_space<vmem>>, vector<1x8x1x32xf32>
    %53 = vector.shape_cast %52 : vector<1x8x1x32xf32> to vector<8x32xf32>
    %cst_50 = arith.constant 0.176776692 : f32
    %54 = vector.broadcast %cst_50 : f32 to vector<8x32xf32>
    %55 = arith.mulf %53, %54 : vector<8x32xf32>
    %c0_51 = arith.constant 0 : index
    %c0_52 = arith.constant 0 : index
    %c2_53 = arith.constant 2 : index
    %c0_54 = arith.constant 0 : index
    %56 = vector.load %arg3[%c0_51, %c0_52, %c2_53, %c0_54] : memref<1x8x4x32xf32, #tpu.memory_space<vmem>>, vector<1x8x1x32xf32>
    %57 = vector.shape_cast %56 : vector<1x8x1x32xf32> to vector<8x32xf32>
    %c0_55 = arith.constant 0 : index
    %c0_56 = arith.constant 0 : index
    %c2_57 = arith.constant 2 : index
    %c0_58 = arith.constant 0 : index
    %58 = vector.load %arg4[%c0_55, %c0_56, %c2_57, %c0_58] : memref<1x8x4x32xf32, #tpu.memory_space<vmem>>, vector<1x8x1x32xf32>
    %59 = vector.shape_cast %58 : vector<1x8x1x32xf32> to vector<8x32xf32>
    %cst_59 = arith.constant dense<0.000000e+00> : vector<8x8xf32>
    %60 = tpu.matmul %55, %57, %cst_59 {dimension_numbers = #tpu.dot_dimension_numbers<[1], [1], [0], [0], [0, 0, 1, 0], [], []>} : vector<8x32xf32>, vector<8x32xf32>, vector<8x8xf32> -> vector<8x8xf32>
    %c0_60 = arith.constant 0 : index
    %c0_61 = arith.constant 0 : index
    %c0_62 = arith.constant 0 : index
    %c0_63 = arith.constant 0 : index
    %61 = vector.load %arg5[%c0_60, %c0_61, %c0_62, %c0_63] : memref<1x1x8x8xf32, #tpu.memory_space<vmem>>, vector<1x1x8x8xf32>
    %62 = vector.shape_cast %61 : vector<1x1x8x8xf32> to vector<8x8xf32>
    %63 = arith.addf %60, %62 : vector<8x8xf32>
    %cst_64 = arith.constant dense<0xFF800000> : vector<8xf32>
    %64 = vector.multi_reduction <maximumf>, %63, %cst_64 [1] : vector<8x8xf32> to vector<8xf32>
    %65 = vector.shape_cast %64 : vector<8xf32> to vector<8x1xf32>
    %66 = vector.broadcast %65 : vector<8x1xf32> to vector<8x8xf32>
    %67 = arith.subf %63, %66 : vector<8x8xf32>
    %68 = math.exp %67 : vector<8x8xf32>
    %cst_65 = arith.constant dense<0.000000e+00> : vector<8xf32>
    %69 = vector.multi_reduction <add>, %68, %cst_65 [1] : vector<8x8xf32> to vector<8xf32>
    %70 = vector.shape_cast %69 : vector<8xf32> to vector<8x1xf32>
    %71 = tpu.reciprocal %70 {approx = true} : vector<8x1xf32> -> vector<8x1xf32>
    %72 = vector.broadcast %71 : vector<8x1xf32> to vector<8x8xf32>
    %73 = arith.mulf %68, %72 : vector<8x8xf32>
    %cst_66 = arith.constant dense<0.000000e+00> : vector<8x32xf32>
    %74 = tpu.matmul %73, %59, %cst_66 {dimension_numbers = #tpu.dot_dimension_numbers<[1], [0], [0], [1], [0, 0, 1, 1], [], []>} : vector<8x8xf32>, vector<8x32xf32>, vector<8x32xf32> -> vector<8x32xf32>
    %c0_67 = arith.constant 0 : index
    %c0_68 = arith.constant 0 : index
    %c2_69 = arith.constant 2 : index
    %c0_70 = arith.constant 0 : index
    %75 = vector.load %arg6[%c0_67, %c0_68, %c2_69, %c0_70] : memref<1x8x4x32xf32, #tpu.memory_space<vmem>>, vector<1x8x1x32xf32>
    %76 = vector.shape_cast %75 : vector<1x8x1x32xf32> to vector<8x32xf32>
    %77 = vector.shape_cast %74 : vector<8x32xf32> to vector<1x8x1x32xf32>
    tpu.vector_store %arg6[%c0_67, %c0_68, %c2_69, %c0_70], %77 {strides = array<i32>} : memref<1x8x4x32xf32, #tpu.memory_space<vmem>>, vector<1x8x1x32xf32>,
    %c0_71 = arith.constant 0 : index
    %c0_72 = arith.constant 0 : index
    %c3 = arith.constant 3 : index
    %c0_73 = arith.constant 0 : index
    %78 = vector.load %arg2[%c0_71, %c0_72, %c3, %c0_73] : memref<1x8x4x32xf32, #tpu.memory_space<vmem>>, vector<1x8x1x32xf32>
    %79 = vector.shape_cast %78 : vector<1x8x1x32xf32> to vector<8x32xf32>
    %cst_74 = arith.constant 0.176776692 : f32
    %80 = vector.broadcast %cst_74 : f32 to vector<8x32xf32>
    %81 = arith.mulf %79, %80 : vector<8x32xf32>
    %c0_75 = arith.constant 0 : index
    %c0_76 = arith.constant 0 : index
    %c3_77 = arith.constant 3 : index
    %c0_78 = arith.constant 0 : index
    %82 = vector.load %arg3[%c0_75, %c0_76, %c3_77, %c0_78] : memref<1x8x4x32xf32, #tpu.memory_space<vmem>>, vector<1x8x1x32xf32>
    %83 = vector.shape_cast %82 : vector<1x8x1x32xf32> to vector<8x32xf32>
    %c0_79 = arith.constant 0 : index
    %c0_80 = arith.constant 0 : index
    %c3_81 = arith.constant 3 : index
    %c0_82 = arith.constant 0 : index
    %84 = vector.load %arg4[%c0_79, %c0_80, %c3_81, %c0_82] : memref<1x8x4x32xf32, #tpu.memory_space<vmem>>, vector<1x8x1x32xf32>
    %85 = vector.shape_cast %84 : vector<1x8x1x32xf32> to vector<8x32xf32>
    %cst_83 = arith.constant dense<0.000000e+00> : vector<8x8xf32>
    %86 = tpu.matmul %81, %83, %cst_83 {dimension_numbers = #tpu.dot_dimension_numbers<[1], [1], [0], [0], [0, 0, 1, 0], [], []>} : vector<8x32xf32>, vector<8x32xf32>, vector<8x8xf32> -> vector<8x8xf32>
    %c0_84 = arith.constant 0 : index
    %c0_85 = arith.constant 0 : index
    %c0_86 = arith.constant 0 : index
    %c0_87 = arith.constant 0 : index
    %87 = vector.load %arg5[%c0_84, %c0_85, %c0_86, %c0_87] : memref<1x1x8x8xf32, #tpu.memory_space<vmem>>, vector<1x1x8x8xf32>
    %88 = vector.shape_cast %87 : vector<1x1x8x8xf32> to vector<8x8xf32>
    %89 = arith.addf %86, %88 : vector<8x8xf32>
    %cst_88 = arith.constant dense<0xFF800000> : vector<8xf32>
    %90 = vector.multi_reduction <maximumf>, %89, %cst_88 [1] : vector<8x8xf32> to vector<8xf32>
    %91 = vector.shape_cast %90 : vector<8xf32> to vector<8x1xf32>
    %92 = vector.broadcast %91 : vector<8x1xf32> to vector<8x8xf32>
    %93 = arith.subf %89, %92 : vector<8x8xf32>
    %94 = math.exp %93 : vector<8x8xf32>
    %cst_89 = arith.constant dense<0.000000e+00> : vector<8xf32>
    %95 = vector.multi_reduction <add>, %94, %cst_89 [1] : vector<8x8xf32> to vector<8xf32>
    %96 = vector.shape_cast %95 : vector<8xf32> to vector<8x1xf32>
    %97 = tpu.reciprocal %96 {approx = true} : vector<8x1xf32> -> vector<8x1xf32>
    %98 = vector.broadcast %97 : vector<8x1xf32> to vector<8x8xf32>
    %99 = arith.mulf %94, %98 : vector<8x8xf32>
    %cst_90 = arith.constant dense<0.000000e+00> : vector<8x32xf32>
    %100 = tpu.matmul %99, %85, %cst_90 {dimension_numbers = #tpu.dot_dimension_numbers<[1], [0], [0], [1], [0, 0, 1, 1], [], []>} : vector<8x8xf32>, vector<8x32xf32>, vector<8x32xf32> -> vector<8x32xf32>
    %c0_91 = arith.constant 0 : index
    %c0_92 = arith.constant 0 : index
    %c3_93 = arith.constant 3 : index
    %c0_94 = arith.constant 0 : index
    %101 = vector.load %arg6[%c0_91, %c0_92, %c3_93, %c0_94] : memref<1x8x4x32xf32, #tpu.memory_space<vmem>>, vector<1x8x1x32xf32>
    %102 = vector.shape_cast %101 : vector<1x8x1x32xf32> to vector<8x32xf32>
    %103 = vector.shape_cast %100 : vector<8x32xf32> to vector<1x8x1x32xf32>
    tpu.vector_store %arg6[%c0_91, %c0_92, %c3_93, %c0_94], %103 {strides = array<i32>} : memref<1x8x4x32xf32, #tpu.memory_space<vmem>>, vector<1x8x1x32xf32>,
    return
  }
  func.func @transform_0(%arg0: i32, %arg1: i32) -> (i32, i32, i32, i32) {
    %c0_i32 = arith.constant 0 : i32
    %c0_i32_0 = arith.constant 0 : i32
    %c0_i32_1 = arith.constant 0 : i32
    return %arg0, %arg1, %c0_i32, %c0_i32_0 : i32, i32, i32, i32
  }
  func.func @transform_1(%arg0: i32, %arg1: i32) -> (i32, i32, i32, i32) {
    %c0_i32 = arith.constant 0 : i32
    %c0_i32_0 = arith.constant 0 : i32
    %c0_i32_1 = arith.constant 0 : i32
    %c0_i32_2 = arith.constant 0 : i32
    return %arg0, %c0_i32, %c0_i32_0, %c0_i32_1 : i32, i32, i32, i32
  }
  func.func @transform_2(%arg0: i32, %arg1: i32) -> (i32, i32, i32, i32) {
    %c0_i32 = arith.constant 0 : i32
    %c0_i32_0 = arith.constant 0 : i32
    %c0_i32_1 = arith.constant 0 : i32
    %c0_i32_2 = arith.constant 0 : i32
    return %arg0, %c0_i32, %c0_i32_0, %c0_i32_1 : i32, i32, i32, i32
  }
  func.func @transform_3(%arg0: i32, %arg1: i32) -> (i32, i32, i32, i32) {
    %c0_i32 = arith.constant 0 : i32
    %c0_i32_0 = arith.constant 0 : i32
    %c0_i32_1 = arith.constant 0 : i32
    %c0_i32_2 = arith.constant 0 : i32
    return %c0_i32, %c0_i32_0, %arg1, %c0_i32_1 : i32, i32, i32, i32
  }
  func.func @transform_4(%arg0: i32, %arg1: i32) -> (i32, i32, i32, i32) {
    %c0_i32 = arith.constant 0 : i32
    %c0_i32_0 = arith.constant 0 : i32
    %c0_i32_1 = arith.constant 0 : i32
    return %arg0, %arg1, %c0_i32, %c0_i32_0 : i32, i32, i32, i32
  }
}

</mosaic_0001>

<bundles_post_ra>
// kernel: tpu_custom_call.1
= control target key start
LH: loop header
LB: loop body
LE: loop exit
PB: predicated region body
PF: predicated region fallthrough
CT: control target
= control target key end

     0   :  { %s2856_s0 = inlined_call_operand.hbm [shape: f32[2,8,4,32], index: 0, kind: input, shape index: {}]   ;;  %s2857_s1 = inlined_call_operand.hbm [shape: f32[2,8,4,32], index: 1, kind: input, shape index: {}]   ;;  %s2858_s2 = inlined_call_operand.hbm [shape: f32[2,8,4,32], index: 2, kind: input, shape index: {}]   ;;  %s2859_s3 = inlined_call_operand.hbm [shape: f32[1,1,8,8], index: 3, kind: input, shape index: {}]   ;;  %s2860_s4 = inlined_call_operand.hbm [shape: f32[2,8,4,32], index: 4, kind: output, shape index: {}]  }
   0x1   :  { %2869 = sst [smem:[#allocation17_spill]] %s2856_s0 }
   0x2   :  { %2870 = sst [smem:[#allocation18_spill]] %s2857_s1 }
   0x3   :  { %9 = vsyncpa [#allocation3], 0 }
   0x4   :  { %11 = vsyncpa [#allocation3 + $0x1], 0 }
   0x5   :  { %12 = vsyncpa [#allocation6], 0 }
   0x6   :  { %14 = vsyncpa [#allocation6 + $0x1], 0 }
   0x7   :  { %15 = vsyncpa [#allocation9], 0 }
   0x8   :  { %16 = vsyncpa [#allocation4], 0 }
   0x9   :  { %18 = vsyncpa [#allocation4 + $0x1], 0  ;;  %s2237_s15 = smov 0   ;;  %s2239_s16 = smov 0  }
   0xa   :  { %s2241_s17 = smov 0   ;;  %s2243_s18 = smov 0  }
   0xb   :  { %s2245_s19 = smov 0   ;;  %s2247_s20 = smov 0  }
   0xc LB: > { %2871 = sst [smem:[#allocation15_spill]] %s2194_s19  ;;  %s36_s21 = sadd.s32 1, %s2194_s19  ;;  %s2198_s20 = sphi %s2247_s20, %s24_s20   ;;  %s2194_s19 = sphi %s2245_s19, %s2889_s19   ;;  %s2190_s18 = sphi %s2243_s18, %s2888_s18   ;;  %s2186_s17 = sphi %s2241_s17, %s2892_s17   ;;  %s2182_s16 = sphi %s2239_s16, %s2891_s16   ;;  %s2178_s15 = sphi %s2237_s15, %s2890_s15  }
   0xd   : > { %s45_s22 = sadd.s32 1, %s2186_s17  ;;  %p38_p0 = scmp.ge.s32.totalorder %s36_s21, 2 }
   0xe   : > { %p52_p1 = scmp.ne.s32.totalorder %s2186_s17, %s2182_s16  ;;  %p53_p2 = scmp.eq.s32.totalorder %s2198_s20, 0 }
   0xf   : > { %s2894_s21 = smov (%p38_p0, %s36_s21), 0  ;;  %p1925_p5 = scmp.lt.s32.totalorder %s2198_s20, 2 }
  0x10   : > { %2872 = sst [smem:[#allocation16_spill]] %s2894_s21  ;;  %p54_p4 = por %p53_p2, %p52_p1 }
  0x11   : > { %s40_s23 = ssub.s32 %s2194_s19, %s2894_s21  ;;  %s201_s24 = sand.u32 1, %s2186_s17  }
  0x12   : > { %p43_p6 = scmp.eq.s32.totalorder %s40_s23, 0  ;;  %s2284_s25 = sshll.u32 %s201_s24, 5 }
  0x13   : > { %s2287_s26 = sshll.u32 %s2194_s19, 9  ;;  %p2289_p7 = pnand %p1925_p5, %p54_p4 }
  0x14   : > { %s2294_s28 = scalar_select %p43_p6, %s2186_s17, %s45_s22  }
  0x15   : > { %s224_s29 = sand.u32 1, %s2198_s20   ;;  %s2874_s1 = sld [smem:[#allocation18_spill]] }
  0x16   : > { %s228_s7 = scalar_lea.vmem [#allocation5], %s2284_s25  ;;  %s2302_s9 = scalar_lea.sflag [#allocation6], %s224_s29 }
  0x17   : > { %s235_s8 = sshll.u32 %s228_s7, 4  ;;  %p2868_p8 = pneg %p2289_p7  ;;  %s236_s8 = int_to_ptr.vmem [resolvable:$true] %s235_s8 }
  0x18   : > { %s2013_s10 = scalar_lea.vmem %s236_s8, 512  ;;  %s2200_s11 = smov [#allocation5]  }
  0x19   : > { %p2014_p9 = scmp.ne.s32.totalorder %s236_s8, %s2013_s10  ;;  %s2018_s12 = sshll.u32 %s2200_s11, 4  ;;  %s2019_s12 = int_to_ptr.vmem [resolvable:$false] %s2018_s12 }
  0x1a   : > { %s2020_s13 = scalar_lea.vmem %s2019_s12, 1024  ;;  %p2021_p12 = scmp.lt.s32.totalorder %s236_s8, %s2019_s12 }
  0x1b   : > { %s234_s6 = scalar_lea.hbm %s2874_s1, %s2287_s26  ;;  %p2016_p10 = pnand %p2014_p9, %p2868_p8 }
  0x1c   : > { %p2022_p13 = scmp.lt.s32.totalorder %s2020_s13, %s2013_s10 }
  0x1d   : > { %p2017_p11 = pneg %p2016_p10 }
  0x1e   : > { %p2023_p0 = por %p2022_p13, %p2021_p12 }
  0x20   : > { %p2024_p2 = pnand %p2023_p0, %p2017_p11 }
  0x22   : > { %2027 = shalt.err (!%p2024_p2)
}
  0x23   : > { %s2861_s14 = smov 64   ;;  %s2863_s22 = smov 4  }
  0x24   : > { %1916 = dma.hbm_to_vmem [thread:$0]  (!%p2289_p7), %s234_s6, 512, %s236_s8, %s2302_s9, %s2861_s14, %s2861_s14, %s2863_s22  }
  0x25   : > { %s2316_s23 = sadd.s32 4294967295, %s2198_s20   ;;  %s1798_s29 = sadd.s32 4294967294, %s2198_s20  }
  0x26   : > { %p58_p4 = scmp.ne.s32.totalorder %s2182_s16, %s2178_s15  ;;  %p2867_p5 = scmp.eq.s32.totalorder %s2316_s23, 0 }
  0x27   : > { %p162_p6 = scmp.eq.s32.totalorder %s2316_s23, 1  ;;  %p168_p9 = scmp.eq.s32.totalorder %s1798_s29, 1 }
  0x28   : > { %p1799_p10 = scmp.ge.s32.totalorder %s2198_s20, 1  ;;  %p2326_p11 = por %p2867_p5, %p58_p4 }
  0x29   : > { %p2333_p12 = por %p162_p6, %p52_p1  ;;  %p2337_p13 = por %p168_p9, %p58_p4 }
  0x2a   : > { %p175_p0 = scmp.lt.s32.totalorder %s2198_s20, 3  ;;  %s2203_s8 = smov [#allocation8]  }
  0x2b   : > { %s2877_s6 = scalar_select %p2337_p13, 1, 0 }
  0x2c   : > { %p2342_p2 = pnand %p1799_p10, %p175_p0  ;;  %s190_s10 = sshll.u32 %s2203_s8, 4  ;;  %s2346_s10 = int_to_ptr.vmem [resolvable:$true] %s190_s10 }
  0x2d   : > { %s2879_s0 = sld [smem:[#allocation17_spill]]  ;;  %s205_s29 = scalar_lea.vmem [#allocation2], %s2284_s25 }
  0x2e   : > { %p1906_p1 = pneg %p2342_p2  ;;  %s214_s14 = sshll.u32 %s205_s29, 4  ;;  %s215_s14 = int_to_ptr.vmem [resolvable:$true] %s214_s14 }
  0x2f   : > { %s202_s1 = scalar_lea.sflag [#allocation3], %s201_s24  ;;  %s2041_s21 = scalar_lea.vmem %s215_s14, 512 }
  0x30   : > { %p2357_p4 = pnand %p1906_p1, %p2867_p5  ;;  %p2042_p6 = scmp.ne.s32.totalorder %s215_s14, %s2041_s21 }
  0x31   : > { %s2204_s8 = smov [#allocation2]  }
  0x32   : > { %p2044_p9 = pnand %p2042_p6, %p2868_p8  ;;  %s2046_s19 = sshll.u32 %s2204_s8, 4  ;;  %s2047_s19 = int_to_ptr.vmem [resolvable:$false] %s2046_s19 }
  0x33   : > { %s213_s13 = scalar_lea.hbm %s2879_s0, %s2287_s26  ;;  %s2048_s11 = scalar_lea.vmem %s2047_s19, 1024 }
  0x34   : > { %p2045_p10 = pneg %p2044_p9  ;;  %p2049_p0 = scmp.lt.s32.totalorder %s215_s14, %s2047_s19 }
  0x35   : > { %p2050_p3 = scmp.lt.s32.totalorder %s2048_s11, %s2041_s21 }
  0x37   : > { %p2051_p13 = por %p2050_p3, %p2049_p0 }
  0x39   : > { %p2052_p1 = pnand %p2051_p13, %p2045_p10 }
  0x3b   : > { %2055 = shalt.err (!%p2052_p1)
}
  0x3c   : > { %s2881_s12 = smov 4   ;;  %s2882_s29 = smov 64  }
  0x3d   : > { %1913 = dma.hbm_to_vmem [thread:$0]  (!%p2289_p7), %s213_s13, 512, %s215_s14, %s202_s1, %s2882_s29, %s2882_s29, %s2881_s12  }
  0x3e   : > { %p2058_p6 = pneg %p2357_p4  ;;  %s2067_s24 = scalar_lea.vmem %s2346_s10, 128 }
  0x3f   : > { %p2068_p9 = scmp.ne.s32.totalorder %s2346_s10, %s2067_s24  ;;  %p2075_p3 = scmp.lt.s32.totalorder %s2346_s10, %s2346_s10 }
  0x40   : > { %p2076_p13 = scmp.lt.s32.totalorder %s2067_s24, %s2067_s24 }
  0x41   : > { %p2070_p5 = pnand %p2068_p9, %p2058_p6 }
  0x42   : > { %p2077_p10 = por %p2076_p13, %p2075_p3 }
  0x43   : > { %p2071_p8 = pneg %p2070_p5 }
  0x45   : > { %p2078_p0 = pnand %p2077_p10, %p2071_p8 }
  0x47   : > { %2081 = shalt.err (!%p2078_p0)
}
  0x48   : > { %1909 = dma.hbm_to_vmem [thread:$0]  (!%p2357_p4), %s2859_s3, 128, %s2346_s10, [#allocation9]  }
  0x49   : > { %s255_s13 = scalar_lea.hbm %s2858_s2, %s2287_s26  ;;  %s249_s8 = scalar_lea.vmem [#allocation7], %s2284_s25 }
  0x4a   : > { %s256_s11 = sshll.u32 %s249_s8, 4  ;;  %p2883_p5 = pneg %p2289_p7  ;;  %s257_s11 = int_to_ptr.vmem [resolvable:$true] %s256_s11 }
  0x4b   : > { %s2095_s24 = scalar_lea.vmem %s257_s11, 512  ;;  %s2205_s22 = smov [#allocation7]  }
  0x4c   : > { %p2096_p8 = scmp.ne.s32.totalorder %s257_s11, %s2095_s24  ;;  %s2100_s0 = sshll.u32 %s2205_s22, 4  ;;  %s2101_s0 = int_to_ptr.vmem [resolvable:$false] %s2100_s0 }
  0x4d   : > { %s2102_s19 = scalar_lea.vmem %s2101_s0, 1024  ;;  %p2103_p9 = scmp.lt.s32.totalorder %s257_s11, %s2101_s0 }
  0x4e   : > { %p2098_p1 = pnand %p2096_p8, %p2883_p5  ;;  %p2104_p3 = scmp.lt.s32.totalorder %s2102_s19, %s2095_s24 }
  0x50   : > { %p2099_p6 = pneg %p2098_p1  ;;  %p2105_p4 = por %p2104_p3, %p2103_p9 }
  0x52   : > { %p2106_p13 = pnand %p2105_p4, %p2099_p6 }
  0x54   : > { %2109 = shalt.err (!%p2106_p13)
}
  0x55   : > { %1919 = dma.hbm_to_vmem [thread:$0]  (!%p2289_p7), %s255_s13, 512, %s257_s11, %s2302_s9, %s2882_s29, %s2882_s29, %s2881_s12  }
  0x56   : > { %268 = sbr.rel (%p2342_p2) target bundleno = 1362 (0x552), region = 36  ;;  %s2400_s25 = sand.u32 (!%p2342_p2), 1, %s2182_s16  }
  0x57   : > { %s2403_s0 = sshll.u32 (!%p2342_p2), %s2400_s25, 5  ;;  %s271_s26 = scalar_lea.sflag (!%p2342_p2), [#allocation3], %s2400_s25 }
  0x58   : > { %s2407_s10 = scalar_lea.vmem (!%p2342_p2), [#allocation2], %s2403_s0 }
  0x5b   : > { %2161 = dma.done.wait (%p2326_p11), %s271_s26, 512  }
  0x5c   : > { %2163 = vsyncadd (%p2326_p11), %s271_s26, 4294966784  ;;  %s279_s27 = sand.u32 1, %s2316_s23   ;;  %s2415_s7 = scalar_lea.vmem [#allocation5], %s2403_s0 }
  0x5d   : > { %s280_s9 = scalar_lea.sflag [#allocation6], %s279_s27 }
  0x5e   : > { %2165 = dma.done.wait (%p2326_p11), %s280_s9, 1024  }
  0x5f   : > { %2167 = vsyncadd (%p2326_p11), %s280_s9, 4294966272  ;;  %s2422_s12 = scalar_lea.vmem [#allocation7], %s2403_s0  ;;  %p2884_p7 = scmp.eq.s32.totalorder %s2316_s23, 0 }
  0x61   : > { %2169 = dma.done.wait (%p2884_p7), [#allocation9], 128   ;;  %p2885_p2 = pmov %p2884_p7 }
  0x62   : > { %v2206_v0 = vmov 0.0   ;;  %vm2207_vm0 = vmmov 0   ;;  %vm375_vm1 = vcmask 1041409   ;;  %vm378_vm2 = vcmask 1042434   ;;  %v349_v1 = vld [vmem:[%s2415_s7] sm:$0x1] }
  0x63   : > { %2171 = vsyncadd (%p2885_p2), [#allocation9], 4294967168  ;;  %1854 = vmatprep.subr.mxu0 %v2206_v0  ;;  %1859 = vmatprep.subr.mxu1 %v2206_v0  ;;  %vm381_vm3 = vcmask 1043459   ;;  %vm384_vm4 = vcmask 1044484   ;;  %vm387_vm5 = vcmask 1045509   ;;  %vm390_vm6 = vcmask 1046534  }
  0x64   : > { %1856 = vmatprep.mubr.msk.f32.mxu0 %vm2207_vm0, %v2206_v0  ;;  %1861 = vmatprep.mubr.msk.f32.mxu1 %vm2207_vm0, %v2206_v0  ;;  %vm393_vm7 = vcmask 1047559   ;;  %v350_v2 = vld [vmem:[%s2415_s7 + $0x4] sm:$0x1]  ;;  %v351_v3 = vld [vmem:[%s2415_s7 + $0x8] sm:$0x1]  ;;  %vm417_vm8 = vcmask 261120  }
  0x65   : > { %v352_v4 = vld [vmem:[%s2415_s7 + $0xc] sm:$0x1]  ;;  %v353_v5 = vld [vmem:[%s2415_s7 + $0x10] sm:$0x1]  ;;  %v354_v6 = vld [vmem:[%s2415_s7 + $0x14] sm:$0x1] }
  0x66   : > { %v355_v7 = vld [vmem:[%s2415_s7 + $0x18] sm:$0x1]  ;;  %v356_v8 = vld [vmem:[%s2415_s7 + $0x1c] sm:$0x1]  ;;  %v403_v9 = vrot.slane %v350_v2, 7  ;;  %v405_v10 = vrot.slane %v351_v3, 6 }
  0x67   : > { %v407_v11 = vrot.slane %v352_v4, 5  ;;  %v409_v12 = vrot.slane %v353_v5, 4  ;;  %v411_v13 = vrot.slane %v354_v6, 3  ;;  %v333_v14 = vld [vmem:[%s2407_s10] sm:$0x1]  ;;  %v413_v16 = vrot.slane %v355_v7, 2 }
  0x68   : > { %v404_v15 = vsel %vm375_vm1, %v403_v9, %v349_v1  ;;  %v415_v17 = vrot.slane %v356_v8, 1  ;;  %v334_v18 = vld [vmem:[%s2407_s10 + $0x4] sm:$0x1]  ;;  %v335_v19 = vld [vmem:[%s2407_s10 + $0x8] sm:$0x1]  ;;  %vm492_vm9 = vcmask 64512  }
  0x69   : > { %v406_v20 = vsel %vm378_vm2, %v405_v10, %v404_v15  ;;  %v336_v21 = vld [vmem:[%s2407_s10 + $0xc] sm:$0x1]  ;;  %v337_v22 = vld [vmem:[%s2407_s10 + $0x10] sm:$0x1]  ;;  %v338_v23 = vld [vmem:[%s2407_s10 + $0x14] sm:$0x1] }
  0x6a   : > { %v408_v24 = vsel %vm381_vm3, %v407_v11, %v406_v20  ;;  %v339_v25 = vld [vmem:[%s2407_s10 + $0x18] sm:$0x1]  ;;  %v340_v26 = vld [vmem:[%s2407_s10 + $0x1c] sm:$0x1]  ;;  %v341_v27 = vmul.f32 0.17677669, %v333_v14 }
  0x6b   : > { %v410_v28 = vsel %vm384_vm4, %v409_v12, %v408_v24  ;;  %v342_v29 = vmul.f32 0.17677669, %v334_v18  ;;  %v343_v30 = vmul.f32 0.17677669, %v335_v19  ;;  %v344_v31 = vmul.f32 0.17677669, %v336_v21 }
  0x6c   : > { %v412_v32 = vsel %vm387_vm5, %v411_v13, %v410_v28  ;;  %v345_v33 = vmul.f32 0.17677669, %v337_v22  ;;  %v346_v34 = vmul.f32 0.17677669, %v338_v23  ;;  %v347_v35 = vmul.f32 0.17677669, %v339_v25 }
  0x6d   : > { %v414_v36 = vsel %vm390_vm6, %v413_v16, %v412_v32  ;;  %v348_v37 = vmul.f32 0.17677669, %v340_v26  ;;  %v374_v38 = vrot.slane %v342_v29, 7  ;;  %v377_v39 = vrot.slane %v343_v30, 6  ;;  %v2469_v53 = vld [vmem:[#allocation8] sm:$0xff]  ;;  %s2641_s23 = scalar_lea.vmem [#allocation10], %s2403_s0 }
  0x6e   : > { %v416_v40 = vsel %vm393_vm7, %v415_v17, %v414_v36  ;;  %v380_v41 = vrot.slane %v344_v31, 5  ;;  %v383_v42 = vrot.slane %v345_v33, 4  ;;  %v386_v44 = vrot.slane %v346_v34, 3  ;;  %v357_v63 = vld [vmem:[%s2422_s12] sm:$0x1]  ;;  %s1837_s30 = sshll.u32 %s2190_s18, 9 }
  0x6f   : > { %1855 = vmatpush3.xpose.msk.msra.mxu0 %vm417_vm8, %v416_v40  ;;  %v376_v43 = vsel %vm375_vm1, %v374_v38, %v341_v27  ;;  %v389_v46 = vrot.slane %v347_v35, 2  ;;  %v392_v48 = vrot.slane %v348_v37, 1  ;;  %v358_v1 = vld [vmem:[%s2422_s12 + $0x4] sm:$0x1]  ;;  %v359_v2 = vld [vmem:[%s2422_s12 + $0x8] sm:$0x1]  ;;  %s2798_s1 = scalar_lea.hbm %s2860_s4, %s1837_s30 }
  0x70   : > { %v379_v45 = vsel %vm378_vm2, %v377_v39, %v376_v43  ;;  %1869 = vmatprep.subr.mxu0 %v2206_v0  ;;  %v360_v3 = vld [vmem:[%s2422_s12 + $0xc] sm:$0x1]  ;;  %v361_v4 = vld [vmem:[%s2422_s12 + $0x10] sm:$0x1]  ;;  %v362_v5 = vld [vmem:[%s2422_s12 + $0x14] sm:$0x1] }
  0x71   : > { %v382_v47 = vsel %vm381_vm3, %v380_v41, %v379_v45  ;;  %v363_v6 = vld [vmem:[%s2422_s12 + $0x18] sm:$0x1]  ;;  %v512_v7 = vrot.slane %v358_v1, 7  ;;  %v514_v8 = vrot.slane %v359_v2, 6  ;;  %v364_v9 = vld [vmem:[%s2422_s12 + $0x1c] sm:$0x1] }
  0x72   : > { %v385_v49 = vsel %vm384_vm4, %v383_v42, %v382_v47  ;;  %v516_v10 = vrot.slane %v360_v3, 5  ;;  %v518_v11 = vrot.slane %v361_v4, 4  ;;  %v520_v13 = vrot.slane %v362_v5, 3  ;;  %v684_v22 = vld [vmem:[%s2415_s7 + $0x5] sm:$0x1]  ;;  %s1655_s29 = sshll.u32 %s2641_s23, 4  ;;  %s2800_s29 = int_to_ptr.vmem [resolvable:$true] %s1655_s29 }
  0x73   : > { %v388_v50 = vsel %vm387_vm5, %v386_v44, %v385_v49  ;;  %v513_v12 = vsel %vm375_vm1, %v512_v7, %v357_v63  ;;  %v522_v15 = vrot.slane %v363_v6, 2  ;;  %v524_v17 = vrot.slane %v364_v9, 1  ;;  %v685_v23 = vld [vmem:[%s2415_s7 + $0x9] sm:$0x1]  ;;  %v686_v24 = vld [vmem:[%s2415_s7 + $0xd] sm:$0x1] }
  0x74   : > { %v391_v51 = vsel %vm390_vm6, %v389_v46, %v388_v50  ;;  %v515_v14 = vsel %vm378_vm2, %v514_v8, %v513_v12  ;;  %v2497_v25 = vld [vmem:[%s2415_s7 + $0x11] sm:$0x1]  ;;  %v730_v26 = vrot.slane %v684_v22, 7  ;;  %v732_v27 = vrot.slane %v685_v23, 6  ;;  %v668_v28 = vld [vmem:[%s2407_s10 + $0x5] sm:$0x1] }
  0x75   : > { %v394_v52 = vsel %vm393_vm7, %v392_v48, %v391_v51  ;;  %v517_v16 = vsel %vm381_vm3, %v516_v10, %v515_v14  ;;  %v683_v29 = vld [vmem:[%s2415_s7 + $0x1] sm:$0x1]  ;;  %v2502_v30 = vld [vmem:[%s2415_s7 + $0x15] sm:$0x1]  ;;  %v669_v32 = vld [vmem:[%s2407_s10 + $0x9] sm:$0x1] }
  0x76   : > { %1857 = vmatmul.mubr.msk.f32.vlgmr.msra.gmra.mxu0 %vm417_vm8, %v394_v52  ;;  %v519_v18 = vsel %vm384_vm4, %v518_v11, %v517_v16  ;;  %v667_v31 = vld [vmem:[%s2407_s10 + $0x1] sm:$0x1]  ;;  %v2507_v33 = vld [vmem:[%s2415_s7 + $0x19] sm:$0x1]  ;;  %v734_v34 = vrot.slane %v686_v24, 5  ;;  %v736_v35 = vrot.slane %v2497_v25, 4  ;;  %v731_v48 = vsel %vm375_vm1, %v730_v26, %v683_v29 }
  0x77   : > { %1871 = vmatprep.mubr.msk.f32.mxu0 %vm2207_vm0, %v2206_v0  ;;  %v521_v19 = vsel %vm387_vm5, %v520_v13, %v519_v18  ;;  %v670_v36 = vld [vmem:[%s2407_s10 + $0xd] sm:$0x1]  ;;  %v2512_v37 = vld [vmem:[%s2415_s7 + $0x1d] sm:$0x1]  ;;  %v671_v38 = vld [vmem:[%s2407_s10 + $0x11] sm:$0x1] }
  0x78   : > { %v523_v20 = vsel %vm390_vm6, %v522_v15, %v521_v19  ;;  %v672_v39 = vld [vmem:[%s2407_s10 + $0x15] sm:$0x1]  ;;  %v673_v40 = vld [vmem:[%s2407_s10 + $0x19] sm:$0x1]  ;;  %v674_v41 = vld [vmem:[%s2407_s10 + $0x1d] sm:$0x1] }
  0x79   : > { %v525_v21 = vsel %vm393_vm7, %v524_v17, %v523_v20  ;;  %v676_v42 = vmul.f32 0.17677669, %v668_v28  ;;  %v677_v43 = vmul.f32 0.17677669, %v669_v32  ;;  %v738_v44 = vrot.slane %v2502_v30, 3  ;;  %s1640_s14 = scalar_lea.sflag [#allocation4], %s2400_s25 }
  0x7a   : > { %1860 = vmatpush3.msra.mxu1 %v525_v21  ;;  %v740_v45 = vrot.slane %v2507_v33, 2  ;;  %v675_v46 = vmul.f32 0.17677669, %v667_v31  ;;  %v1008_v47 = vld [vmem:[%s2415_s7 + $0x6] sm:$0x1]  ;;  %vm658_vm10 = vcmask 253952  }
  0x7b   : > { %1864 = vmatprep.subr.mxu1 %v2206_v0  ;;  %v678_v49 = vmul.f32 0.17677669, %v670_v36  ;;  %v2522_v50 = vmul.f32 0.17677669, %v671_v38  ;;  %v992_v51 = vld [vmem:[%s2407_s10 + $0x6] sm:$0x1] }
  0x7c   : > { %v2525_v52 = vmul.f32 0.17677669, %v672_v39  ;;  %v991_v63 = vld [vmem:[%s2407_s10 + $0x2] sm:$0x1]  ;;  %v993_v1 = vld [vmem:[%s2407_s10 + $0xa] sm:$0x1] }
  0x7d   : > { %v1000_v2 = vmul.f32 0.17677669, %v992_v51  ;;  %v712_v3 = vrot.slane %v678_v49, 5  ;;  %v714_v4 = vrot.slane %v2522_v50, 4  ;;  %v1007_v5 = vld [vmem:[%s2415_s7 + $0x2] sm:$0x1] }
  0x7e   : > { %v1316_v6 = vld [vmem:[%s2407_s10 + $0x7] sm:$0x1]  ;;  %v716_v7 = vrot.slane %v2525_v52, 3  ;;  %v1010_v8 = vld [vmem:[%s2415_s7 + $0xe] sm:$0x1]  ;;  %s2110_s13 = scalar_lea.vmem %s2800_s29, 512 }
  0x7f   : > { %v1332_v10 = vld [vmem:[%s2415_s7 + $0x7] sm:$0x1]  ;;  %v994_v13 = vld [vmem:[%s2407_s10 + $0xe] sm:$0x1]  ;;  %v999_v14 = vmul.f32 0.17677669, %v991_v63  ;;  %p2111_p11 = scmp.ne.s32.totalorder %s2800_s29, %s2110_s13 }
  0x80   : > { %v1001_v15 = vmul.f32 0.17677669, %v993_v1  ;;  %v1032_v19 = vrot.slane %v1000_v2, 7  ;;  %v1317_v20 = vld [vmem:[%s2407_s10 + $0xb] sm:$0x1]  ;;  %v1378_v25 = vrot.slane %v1332_v10, 7 }
  0x81   : > { %v1324_v21 = vmul.f32 0.17677669, %v1316_v6  ;;  %v1011_v23 = vld [vmem:[%s2415_s7 + $0x12] sm:$0x1]  ;;  %v1333_v24 = vld [vmem:[%s2415_s7 + $0xb] sm:$0x1]  ;;  %p2112_p10 = pnand %p2111_p11, %p2333_p12 }
  0x82   : > { %v1315_v26 = vld [vmem:[%s2407_s10 + $0x3] sm:$0x1]  ;;  %v995_v29 = vld [vmem:[%s2407_s10 + $0x12] sm:$0x1]  ;;  %v1002_v30 = vmul.f32 0.17677669, %v994_v13 }
  0x83   : > { %v1331_v31 = vld [vmem:[%s2415_s7 + $0x3] sm:$0x1]  ;;  %v1034_v36 = vrot.slane %v1001_v15, 6  ;;  %v1318_v38 = vld [vmem:[%s2407_s10 + $0xf] sm:$0x1]  ;;  %p2113_p0 = pneg %p2112_p10  ;;  %s2209_s8 = smov [#allocation10]  }
  0x84   : > { %v1325_v39 = vmul.f32 0.17677669, %v1317_v20  ;;  %v1003_v49 = vmul.f32 0.17677669, %v995_v29  ;;  %v1379_v50 = vsel %vm375_vm1, %v1378_v25, %v1331_v31  ;;  %v1335_v1 = vld [vmem:[%s2415_s7 + $0x13] sm:$0x1] }
  0x85   : > { %v1013_v6 = vld [vmem:[%s2415_s7 + $0x1a] sm:$0x1]  ;;  %v1321_v29 = vld [vmem:[%s2407_s10 + $0x1b] sm:$0x1]  ;;  %s2114_s11 = sshll.u32 %s2209_s8, 4  ;;  %s2115_s11 = int_to_ptr.vmem [resolvable:$false] %s2114_s11 }
  0x86   : > { %v1358_v2 = vrot.slane %v1325_v39, 6  ;;  %v1038_v13 = vrot.slane %v1003_v49, 4  ;;  %v1337_v31 = vld [vmem:[%s2415_s7 + $0x1b] sm:$0x1]  ;;  %s2116_s24 = scalar_lea.vmem %s2115_s11, 1024  ;;  %p2117_p8 = scmp.lt.s32.totalorder %s2800_s29, %s2115_s11 }
  0x87   : > { %v1388_v49 = vrot.slane %v1337_v31, 2  ;;  %p2118_p5 = scmp.lt.s32.totalorder %s2116_s24, %s2110_s13 }
  0x89   : > { %p2119_p1 = por %p2118_p5, %p2117_p8 }
  0x8b   : > { %p2120_p6 = pnand %p2119_p1, %p2113_p0 }
 0x136   : > { %v488_v54 = vpop.f32.mrf.mxu0 }
 0x137   : > { %v489_v55 = vadd.f32 %v488_v54, %v2469_v53  ;;  %v2527_v54 = vmul.f32 0.17677669, %v673_v40  ;;  %v1033_v40 = vsel %vm375_vm1, %v1032_v19, %v999_v14  ;;  %v1320_v14 = vld [vmem:[%s2407_s10 + $0x17] sm:$0x1] }
 0x138   : > { %v1858_v56 = vpop.f32.mrf.mxu0  ;;  %v1035_v63 = vsel %vm378_vm2, %v1034_v36, %v1033_v40 }
 0x139   : > { %v493_v57 = vsel %vm492_vm9, %v489_v55, -inf  ;;  %v742_v56 = vrot.slane %v2512_v37, 1  ;;  %v718_v17 = vrot.slane %v2527_v54, 2 }
 0x13a   : > { %494 = vmax.xlane.f32.xlu0 %v493_v57  ;;  %v708_v57 = vrot.slane %v676_v42, 7  ;;  %v1380_v42 = vrot.slane %v1333_v24, 6 }
 0x13c   : > { %v709_v12 = vsel %vm375_vm1, %v708_v57, %v675_v46  ;;  %v1060_v57 = vrot.slane %v1011_v23, 4  ;;  %v998_v23 = vld [vmem:[%s2407_s10 + $0x1e] sm:$0x1] }
 0x13d   : > { %v1006_v39 = vmul.f32 0.17677669, %v998_v23 }
 0x1c3   : > { %v495_v58 = vpop.xlane.xlu0 %494 }
 0x1c4   : > { %v496_v59 = vsub.f32 %v489_v55, %v495_v58  ;;  %v2529_v55 = vmul.f32 0.17677669, %v674_v41  ;;  %v710_v58 = vrot.slane %v677_v43, 6  ;;  %v1334_v41 = vld [vmem:[%s2415_s7 + $0xf] sm:$0x1]  ;;  %v1356_v43 = vrot.slane %v1324_v21, 7 }
 0x1c5   : > { %v1014_v21 = vld [vmem:[%s2415_s7 + $0x1e] sm:$0x1] }
 0x1c6   : > { %v497_v60 = vmul.f32 1.442695, %v496_v59  ;;  %v1009_v59 = vld [vmem:[%s2415_s7 + $0xa] sm:$0x1]  ;;  %v720_v22 = vrot.slane %v2529_v55, 1  ;;  %v711_v28 = vsel %vm378_vm2, %v710_v58, %v709_v12  ;;  %v1036_v58 = vrot.slane %v1002_v30, 5 }
 0x1c7   : > { %v1056_v9 = vrot.slane %v1009_v59, 6  ;;  %v713_v51 = vsel %vm381_vm3, %v712_v3, %v711_v28  ;;  %v1319_v59 = vld [vmem:[%s2407_s10 + $0x13] sm:$0x1]  ;;  %v997_v3 = vld [vmem:[%s2407_s10 + $0x1a] sm:$0x1] }
 0x1c8   : > { %1984 = vpow2.f32 %v497_v60  ;;  %v1054_v60 = vrot.slane %v1008_v47, 7  ;;  %v1012_v47 = vld [vmem:[%s2415_s7 + $0x16] sm:$0x1]  ;;  %v1327_v15 = vmul.f32 0.17677669, %v1319_v59 }
 0x1c9   : > { %v1062_v12 = vrot.slane %v1012_v47, 3  ;;  %v1328_v30 = vmul.f32 0.17677669, %v1320_v14 }
 0x1ca   : > { %v1055_v18 = vsel %vm375_vm1, %v1054_v60, %v1007_v5  ;;  %v1326_v60 = vmul.f32 0.17677669, %v1318_v38  ;;  %v1066_v38 = vrot.slane %v1014_v21, 1 }
 0x1cb   : > { %v1057_v32 = vsel %vm378_vm2, %v1056_v9, %v1055_v18  ;;  %v1381_v9 = vsel %vm378_vm2, %v1380_v42, %v1379_v50  ;;  %v1384_v18 = vrot.slane %v1335_v1, 4  ;;  %v1364_v50 = vrot.slane %v1328_v30, 3 }
 0x1cc   : > { %v1360_v19 = vrot.slane %v1326_v60, 5 }
 0x1d5   : > { %v2473_v61 = vpop.eup %1984 }
 0x1d6   : > { %v499_v62 = vsel %vm492_vm9, %v2473_v61, 0.0 }
 0x1d7   : > { %500 = vadd.xlane.f32.xlu0 %v499_v62  ;;  %v733_v62 = vsel %vm378_vm2, %v732_v27, %v731_v48  ;;  %v996_v48 = vld [vmem:[%s2407_s10 + $0x16] sm:$0x1] }
 0x1d8   : > { %v735_v11 = vsel %vm381_vm3, %v734_v34, %v733_v62  ;;  %v1058_v34 = vrot.slane %v1010_v8, 5  ;;  %v1004_v8 = vmul.f32 0.17677669, %v996_v48  ;;  %v1338_v48 = vld [vmem:[%s2415_s7 + $0x1f] sm:$0x1] }
 0x1d9   : > { %v737_v27 = vsel %vm384_vm4, %v736_v35, %v735_v11  ;;  %v1323_v35 = vmul.f32 0.17677669, %v1315_v26  ;;  %v715_v11 = vsel %vm384_vm4, %v714_v4, %v713_v51  ;;  %v1005_v4 = vmul.f32 0.17677669, %v997_v3 }
 0x1da   : > { %v739_v46 = vsel %vm387_vm5, %v738_v44, %v737_v27  ;;  %v1059_v62 = vsel %vm381_vm3, %v1058_v34, %v1057_v32  ;;  %v1382_v44 = vrot.slane %v1334_v41, 5  ;;  %v717_v26 = vsel %vm387_vm5, %v716_v7, %v715_v11 }
 0x1db   : > { %v741_v5 = vsel %vm390_vm6, %v740_v45, %v739_v46  ;;  %v1357_v10 = vsel %vm375_vm1, %v1356_v43, %v1323_v35  ;;  %v1061_v33 = vsel %vm384_vm4, %v1060_v57, %v1059_v62  ;;  %v1037_v45 = vsel %vm381_vm3, %v1036_v58, %v1035_v63  ;;  %v1322_v35 = vld [vmem:[%s2407_s10 + $0x1f] sm:$0x1] }
 0x1dc   : > { %v743_v20 = vsel %vm393_vm7, %v742_v56, %v741_v5  ;;  %v1383_v24 = vsel %vm381_vm3, %v1382_v44, %v1381_v9  ;;  %v1359_v25 = vsel %vm378_vm2, %v1358_v2, %v1357_v10  ;;  %v1064_v27 = vrot.slane %v1013_v6, 2 }
 0x1dd   : > { %v1040_v28 = vrot.slane %v1004_v8, 3  ;;  %v1063_v37 = vsel %vm387_vm5, %v1062_v12, %v1061_v33  ;;  %v1039_v56 = vsel %vm384_vm4, %v1038_v13, %v1037_v45  ;;  %v1362_v34 = vrot.slane %v1327_v15, 4 }
 0x1de   : > { %v1385_v52 = vsel %vm384_vm4, %v1384_v18, %v1383_v24  ;;  %v1361_v7 = vsel %vm381_vm3, %v1360_v19, %v1359_v25  ;;  %v719_v41 = vsel %vm390_vm6, %v718_v17, %v717_v26  ;;  %v1042_v42 = vrot.slane %v1005_v4, 2 }
 0x1df   : > { %v1329_v43 = vmul.f32 0.17677669, %v1321_v29  ;;  %v1065_v46 = vsel %vm390_vm6, %v1064_v27, %v1063_v37  ;;  %v1041_v47 = vsel %vm387_vm5, %v1040_v28, %v1039_v56  ;;  %v721_v54 = vsel %vm393_vm7, %v720_v22, %v719_v41 }
 0x1e0   : > { %v1044_v17 = vrot.slane %v1006_v39, 1  ;;  %v1330_v57 = vmul.f32 0.17677669, %v1322_v35  ;;  %v1067_v58 = vsel %vm393_vm7, %v1066_v38, %v1065_v46  ;;  %v1043_v59 = vsel %vm390_vm6, %v1042_v42, %v1041_v47 }
 0x1e1   : > { %v1390_v60 = vrot.slane %v1338_v48, 1  ;;  %v1366_v62 = vrot.slane %v1329_v43, 2  ;;  %v2208_v6 = vmov 1966171168   ;;  %v605_v8 = vlaneseq }
 0x1e2   : > { %v1045_v55 = vsel %vm393_vm7, %v1044_v17, %v1043_v59  ;;  %v1368_v22 = vrot.slane %v1330_v57, 1  ;;  %v603_v3 = vunpack.c.l.s4 %v2208_v6  ;;  %v691_v57 = vld [vmem:[%s2422_s12 + $0x1] sm:$0x1]  ;;  %v695_v59 = vld [vmem:[%s2422_s12 + $0x11] sm:$0x1] }
 0x1e3   : > { %v606_v10 = vshrl.u32 %v605_v8, 7 }
 0x1e4   : > { %v604_v9 = vunpack.c.0.s8 %v603_v3 }
 0x1e6   : > { %v2633_v11 = vsub.s32 %v604_v9, %v606_v10 }
 0x260   : > { %v501_v16 = vpop.xlane.xlu0 %500 }
 0x261   : > { %1986 = vrcp.f32 %v501_v16  ;;  %v1336_v16 = vld [vmem:[%s2415_s7 + $0x17] sm:$0x1] }
 0x262   : > { %v1386_v32 = vrot.slane %v1336_v16, 3 }
 0x264   : > { %v1387_v51 = vsel %vm387_vm5, %v1386_v32, %v1385_v52 }
 0x265   : > { %v1389_v63 = vsel %vm390_vm6, %v1388_v49, %v1387_v51 }
 0x266   : > { %v1391_v44 = vsel %vm393_vm7, %v1390_v60, %v1389_v63  ;;  %v696_v60 = vld [vmem:[%s2422_s12 + $0x15] sm:$0x1] }
 0x26e   : > { %v1987_v36 = vpop.eup %1986 }
 0x26f   : > { %v503_v40 = vmul.f32 %v1987_v36, %v2473_v61  ;;  %v1363_v61 = vsel %vm384_vm4, %v1362_v34, %v1361_v7 }
 0x270   : > { %v1365_v1 = vsel %vm387_vm5, %v1364_v50, %v1363_v61  ;;  %v692_v61 = vld [vmem:[%s2422_s12 + $0x5] sm:$0x1] }
 0x271   : > { %1862 = vmatmul.mubr.msk.f32.vlgmr.msra.gmra.mxu1 %vm492_vm9, %v503_v40  ;;  %v1367_v2 = vsel %vm390_vm6, %v1366_v62, %v1365_v1  ;;  %v837_v17 = vrot.slane %v692_v61, 7  ;;  %v697_v62 = vld [vmem:[%s2422_s12 + $0x19] sm:$0x1]  ;;  %v698_v1 = vld [vmem:[%s2422_s12 + $0x1d] sm:$0x1] }
 0x272   : > { %1865 = vmatpush3.xpose.msk.msra.mxu1 %vm417_vm8, %v743_v20  ;;  %1866 = vmatprep.mubr.msk.f32.mxu1 %vm2207_vm0, %v2206_v0  ;;  %v1369_v5 = vsel %vm393_vm7, %v1368_v22, %v1367_v2  ;;  %v845_v2 = vrot.slane %v696_v60, 3  ;;  %v847_v6 = vrot.slane %v697_v62, 2  ;;  %v849_v8 = vrot.slane %v698_v1, 1 }
 0x273   : > { %1874 = vmatprep.subr.mxu1 %v2206_v0  ;;  %v838_v63 = vsel %vm375_vm1, %v837_v17, %v691_v57  ;;  %v1346_v57 = vld [vmem:[%s2422_s12 + $0x1f] sm:$0x1] }
 0x274   : > { %v1497_v1 = vrot.slane %v1346_v57, 1 }
 0x275   : > { %1867 = vmatmul.mubr.msk.f32.vlgmr.msra.gmra.mxu1 %vm417_vm8, %v721_v54  ;;  %v693_v54 = vld [vmem:[%s2422_s12 + $0x9] sm:$0x1] }
 0x276   : > { %1875 = vmatpush3.xpose.msk.msra.mxu1 %vm417_vm8, %v1067_v58  ;;  %1876 = vmatprep.mubr.msk.f32.mxu1 %vm2207_vm0, %v2206_v0  ;;  %v694_v58 = vld [vmem:[%s2422_s12 + $0xd] sm:$0x1] }
 0x277   : > { %1884 = vmatprep.subr.mxu1 %v2206_v0  ;;  %v841_v22 = vrot.slane %v694_v58, 5 }
 0x279   : > { %1877 = vmatmul.mubr.msk.f32.vlgmr.msra.gmra.mxu1 %vm417_vm8, %v1045_v55  ;;  %v839_v55 = vrot.slane %v693_v54, 6 }
 0x27a   : > { %1885 = vmatpush3.xpose.msk.msra.mxu1 %vm417_vm8, %v1391_v44  ;;  %1886 = vmatprep.mubr.msk.f32.mxu1 %vm2207_vm0, %v2206_v0  ;;  %v843_v44 = vrot.slane %v695_v59, 4 }
 0x27d   : > { %1887 = vmatmul.mubr.msk.f32.vlgmr.msra.gmra.mxu1 %vm417_vm8, %v1369_v5  ;;  %v840_v5 = vsel %vm378_vm2, %v839_v55, %v838_v63 }
 0x27e   : > { %v842_v3 = vsel %vm381_vm3, %v841_v22, %v840_v5 }
 0x27f   : > { %v844_v9 = vsel %vm384_vm4, %v843_v44, %v842_v3 }
 0x280   : > { %v846_v10 = vsel %vm387_vm5, %v845_v2, %v844_v9 }
 0x331   : > { %v596_v12 = vpop.f32.mrf.mxu1 }
 0x332   : > { %v601_v13 = vcombine.high %v596_v12, %v596_v12  ;;  %v608_v14 = vrot.slane %v596_v12, %v2633_v11  ;;  %v848_v12 = vsel %vm390_vm6, %v847_v6, %v846_v10 }
 0x333   : > { %v1863_v15 = vpop.f32.mrf.mxu1 }
 0x334   : > { %v615_v33 = vrot.slane %v601_v13, %v2633_v11  ;;  %v616_v45 = vcombine.high %v608_v14, %v608_v14  ;;  %v624_v16 = vrot.slane %v608_v14, %v2633_v11  ;;  %v850_v13 = vsel %vm393_vm7, %v849_v8, %v848_v12  ;;  %v1016_v14 = vld [vmem:[%s2422_s12 + $0x6] sm:$0x1]  ;;  %v1017_v15 = vld [vmem:[%s2422_s12 + $0xa] sm:$0x1] }
 0x335   : > { %v814_v18 = vpop.f32.mrf.mxu1  ;;  %1870 = vmatpush3.msra.mxu0 %v850_v13 }
 0x336   : > { %v617_v19 = vcombine.high %v615_v33, %v615_v33  ;;  %v631_v20 = vrot.slane %v615_v33, %v2633_v11  ;;  %v638_v21 = vrot.slane %v616_v45, %v2633_v11  ;;  %v646_v23 = vcombine.high %v624_v16, %v624_v16  ;;  %659 = vst.msk [vmem:[%s2641_s23] sm:$0x1] %vm658_vm10, %v624_v16  ;;  %v1015_v45 = vld [vmem:[%s2422_s12 + $0x2] sm:$0x1]  ;;  %v1340_v16 = vld [vmem:[%s2422_s12 + $0x7] sm:$0x1] }
 0x337   : > { %v815_v4 = vadd.f32 %v814_v18, %v2469_v53  ;;  %v1868_v24 = vpop.f32.mrf.mxu1  ;;  %1879 = vmatprep.subr.mxu0 %v2206_v0  ;;  %v1161_v33 = vrot.slane %v1016_v14, 7  ;;  %v1018_v18 = vld [vmem:[%s2422_s12 + $0xe] sm:$0x1] }
 0x338   : > { %v645_v25 = vrot.slane %v617_v19, %v2633_v11  ;;  %v647_v26 = vcombine.high %v631_v20, %v631_v20  ;;  %v648_v27 = vcombine.high %v638_v21, %v638_v21  ;;  %660 = vst.msk [vmem:[%s2641_s23 + $0x4] sm:$0x1] %vm658_vm10, %v638_v21  ;;  %661 = vst.msk [vmem:[%s2641_s23 + $0x8] sm:$0x1] %vm658_vm10, %v646_v23  ;;  %v1163_v19 = vrot.slane %v1017_v15, 6 }
 0x339   : > { %663 = vst.msk [vmem:[%s2641_s23 + $0x10] sm:$0x1] %vm658_vm10, %v631_v20  ;;  %v818_v28 = vsel %vm492_vm9, %v815_v4, -inf  ;;  %v1138_v29 = vpop.f32.mrf.mxu1  ;;  %v1162_v20 = vsel %vm375_vm1, %v1161_v33, %v1015_v45  ;;  %v1341_v21 = vld [vmem:[%s2422_s12 + $0xb] sm:$0x1]  ;;  %v1485_v23 = vrot.slane %v1340_v16, 7 }
 0x33a   : > { %v649_v30 = vcombine.high %v645_v25, %v645_v25  ;;  %662 = vst.msk [vmem:[%s2641_s23 + $0xc] sm:$0x1] %vm658_vm10, %v648_v27  ;;  %664 = vst.msk [vmem:[%s2641_s23 + $0x14] sm:$0x1] %vm658_vm10, %v645_v25  ;;  %819 = vmax.xlane.f32.xlu1 %v818_v28  ;;  %v1139_v37 = vadd.f32 %v1138_v29, %v2469_v53  ;;  %v1019_v24 = vld [vmem:[%s2422_s12 + $0x12] sm:$0x1]  ;;  %v1164_v27 = vsel %vm378_vm2, %v1163_v19, %v1162_v20 }
 0x33b   : > { %665 = vst.msk [vmem:[%s2641_s23 + $0x18] sm:$0x1] %vm658_vm10, %v647_v26  ;;  %v1878_v56 = vpop.f32.mrf.mxu1  ;;  %v1165_v25 = vrot.slane %v1018_v18, 5  ;;  %v1342_v28 = vld [vmem:[%s2422_s12 + $0xf] sm:$0x1]  ;;  %v1487_v29 = vrot.slane %v1341_v21, 6 }
 0x33c   : > { %666 = vst.msk [vmem:[%s2641_s23 + $0x1c] sm:$0x1] %vm658_vm10, %v649_v30  ;;  %v1142_v31 = vsel %vm492_vm9, %v1139_v37, -inf  ;;  %v1167_v56 = vrot.slane %v1019_v24, 4 }
 0x33d   : > { %v1462_v32 = vpop.f32.mrf.mxu1 }
 0x33e   : > { %1143 = vmax.xlane.f32.xlu1 %v1142_v31  ;;  %v1463_v34 = vadd.f32 %v1462_v32, %v2469_v53  ;;  %v1166_v31 = vsel %vm381_vm3, %v1165_v25, %v1164_v27  ;;  %v1343_v32 = vld [vmem:[%s2422_s12 + $0x13] sm:$0x1] }
 0x33f   : > { %v1888_v36 = vpop.f32.mrf.mxu1 }
 0x340   : > { %v1466_v38 = vsel %vm492_vm9, %v1463_v34, -inf }
 0x341   : > { %1467 = vmax.xlane.f32.xlu0 %v1466_v38 }
 0x3c3   : > { %v820_v39 = vpop.xlane.xlu1 %819 }
 0x3c4   : > { %v821_v52 = vsub.f32 %v815_v4, %v820_v39  ;;  %v1339_v4 = vld [vmem:[%s2422_s12 + $0x3] sm:$0x1]  ;;  %v1021_v39 = vld [vmem:[%s2422_s12 + $0x1a] sm:$0x1] }
 0x3c5   : > { %v1486_v30 = vsel %vm375_vm1, %v1485_v23, %v1339_v4 }
 0x3c6   : > { %v822_v7 = vmul.f32 1.442695, %v821_v52  ;;  %v1488_v38 = vsel %vm378_vm2, %v1487_v29, %v1486_v30 }
 0x3c7   : > { %v1144_v40 = vpop.xlane.xlu1 %1143 }
 0x3c8   : > { %1988 = vpow2.f32 %v822_v7  ;;  %v1145_v41 = vsub.f32 %v1139_v37, %v1144_v40  ;;  %v1020_v37 = vld [vmem:[%s2422_s12 + $0x16] sm:$0x1]  ;;  %v1168_v7 = vsel %vm384_vm4, %v1167_v56, %v1166_v31  ;;  %v1344_v40 = vld [vmem:[%s2422_s12 + $0x17] sm:$0x1] }
 0x3c9   : > { %v1169_v52 = vrot.slane %v1020_v37, 3 }
 0x3ca   : > { %v1146_v42 = vmul.f32 1.442695, %v1145_v41  ;;  %v1468_v35 = vpop.xlane.xlu0 %1467  ;;  %v1491_v41 = vrot.slane %v1343_v32, 4 }
 0x3cb   : > { %v1469_v43 = vsub.f32 %v1463_v34, %v1468_v35  ;;  %v1489_v34 = vrot.slane %v1342_v28, 5 }
 0x3cc   : > { %1990 = vpow2.f32 %v1146_v42 }
 0x3cd   : > { %v1470_v46 = vmul.f32 1.442695, %v1469_v43  ;;  %v1490_v35 = vsel %vm381_vm3, %v1489_v34, %v1488_v38  ;;  %v1022_v43 = vld [vmem:[%s2422_s12 + $0x1e] sm:$0x1] }
 0x3ce   : > { %v1492_v61 = vsel %vm384_vm4, %v1491_v41, %v1490_v35  ;;  %v1173_v54 = vrot.slane %v1022_v43, 1 }
 0x3cf   : > { %1992 = vpow2.f32 %v1470_v46  ;;  %v1171_v46 = vrot.slane %v1021_v39, 2 }
 0x3d5   : > { %v2666_v53 = vpop.eup %1988 }
 0x3d6   : > { %v824_v47 = vsel %vm492_vm9, %v2666_v53, 0.0 }
 0x3d7   : > { %825 = vadd.xlane.f32.xlu1 %v824_v47  ;;  %v1170_v47 = vsel %vm387_vm5, %v1169_v52, %v1168_v7 }
 0x3d8   : > { %v1172_v17 = vsel %vm390_vm6, %v1171_v46, %v1170_v47 }
 0x3d9   : > { %v2670_v48 = vpop.eup %1990  ;;  %v1174_v63 = vsel %vm393_vm7, %v1173_v54, %v1172_v17 }
 0x3da   : > { %v1148_v49 = vsel %vm492_vm9, %v2670_v48, 0.0 }
 0x3db   : > { %1149 = vadd.xlane.f32.xlu0 %v1148_v49  ;;  %v1345_v49 = vld [vmem:[%s2422_s12 + $0x1b] sm:$0x1] }
 0x3dc   : > { %v2674_v50 = vpop.eup %1992  ;;  %v1495_v58 = vrot.slane %v1345_v49, 2 }
 0x3dd   : > { %v1472_v51 = vsel %vm492_vm9, %v2674_v50, 0.0 }
 0x3de   : > { %1473 = vadd.xlane.f32.xlu1 %v1472_v51  ;;  %v1493_v51 = vrot.slane %v1344_v40, 3 }
 0x3e0   : > { %v1494_v59 = vsel %vm387_vm5, %v1493_v51, %v1492_v61 }
 0x3e1   : > { %v1496_v55 = vsel %vm390_vm6, %v1495_v58, %v1494_v59 }
 0x3e2   : > { %v1498_v2 = vsel %vm393_vm7, %v1497_v1, %v1496_v55 }
 0x460   : > { %v826_v26 = vpop.xlane.xlu1 %825 }
 0x461   : > { %1994 = vrcp.f32 %v826_v26 }
 0x464   : > { %v1150_v36 = vpop.xlane.xlu0 %1149 }
 0x465   : > { %1996 = vrcp.f32 %v1150_v36 }
 0x467   : > { %v1474_v42 = vpop.xlane.xlu1 %1473 }
 0x468   : > { %1998 = vrcp.f32 %v1474_v42 }
 0x46e   : > { %v1995_v60 = vpop.eup %1994 }
 0x46f   : > { %v828_v62 = vmul.f32 %v1995_v60, %v2666_v53 }
 0x471   : > { %1872 = vmatmul.mubr.msk.f32.vlgmr.msra.gmra.mxu0 %vm492_vm9, %v828_v62 }
 0x472   : > { %v1997_v22 = vpop.eup %1996  ;;  %1880 = vmatpush3.msra.mxu0 %v1174_v63  ;;  %1881 = vmatprep.mubr.msk.f32.mxu0 %vm2207_vm0, %v2206_v0 }
 0x473   : > { %1889 = vmatprep.subr.mxu0 %v2206_v0  ;;  %v1152_v44 = vmul.f32 %v1997_v22, %v2670_v48 }
 0x475   : > { %v1999_v5 = vpop.eup %1998  ;;  %1882 = vmatmul.mubr.msk.f32.vlgmr.msra.gmra.mxu0 %vm492_vm9, %v1152_v44 }
 0x476   : > { %1890 = vmatpush3.msra.mxu0 %v1498_v2  ;;  %1891 = vmatprep.mubr.msk.f32.mxu0 %vm2207_vm0, %v2206_v0  ;;  %v1476_v53 = vmul.f32 %v1999_v5, %v2674_v50 }
 0x479   : > { %1892 = vmatmul.mubr.msk.f32.vlgmr.msra.gmra.mxu0 %vm492_vm9, %v1476_v53 }
 0x531   : > { %v921_v6 = vpop.f32.mrf.mxu0 }
 0x532   : > { %v926_v3 = vcombine.high %v921_v6, %v921_v6  ;;  %v933_v8 = vrot.slane %v921_v6, %v2633_v11 }
 0x533   : > { %v1873_v9 = vpop.f32.mrf.mxu0 }
 0x534   : > { %v940_v48 = vrot.slane %v926_v3, %v2633_v11  ;;  %v941_v10 = vcombine.high %v933_v8, %v933_v8  ;;  %v949_v12 = vrot.slane %v933_v8, %v2633_v11 }
 0x535   : > { %v1245_v13 = vpop.f32.mrf.mxu0 }
 0x536   : > { %v942_v14 = vcombine.high %v940_v48, %v940_v48  ;;  %v956_v0 = vrot.slane %v940_v48, %v2633_v11  ;;  %v963_v50 = vrot.slane %v941_v10, %v2633_v11  ;;  %v971_v15 = vcombine.high %v949_v12, %v949_v12  ;;  %983 = vst.msk [vmem:[%s2641_s23 + $0x1] sm:$0x1] %vm658_vm10, %v949_v12 }
 0x537   : > { %v1250_v33 = vcombine.high %v1245_v13, %v1245_v13  ;;  %v1257_v45 = vrot.slane %v1245_v13, %v2633_v11  ;;  %v1883_v16 = vpop.f32.mrf.mxu0 }
 0x538   : > { %v970_v18 = vrot.slane %v942_v14, %v2633_v11  ;;  %v972_v19 = vcombine.high %v956_v0, %v956_v0  ;;  %v973_v20 = vcombine.high %v963_v50, %v963_v50  ;;  %984 = vst.msk [vmem:[%s2641_s23 + $0x5] sm:$0x1] %vm658_vm10, %v963_v50  ;;  %985 = vst.msk [vmem:[%s2641_s23 + $0x9] sm:$0x1] %vm658_vm10, %v971_v15 }
 0x539   : > { %987 = vst.msk [vmem:[%s2641_s23 + $0x11] sm:$0x1] %vm658_vm10, %v956_v0  ;;  %v1264_v21 = vrot.slane %v1250_v33, %v2633_v11  ;;  %v1265_v23 = vcombine.high %v1257_v45, %v1257_v45  ;;  %v1273_v4 = vrot.slane %v1257_v45, %v2633_v11  ;;  %v1569_v24 = vpop.f32.mrf.mxu0 }
 0x53a   : > { %v974_v25 = vcombine.high %v970_v18, %v970_v18  ;;  %986 = vst.msk [vmem:[%s2641_s23 + $0xd] sm:$0x1] %vm658_vm10, %v973_v20  ;;  %988 = vst.msk [vmem:[%s2641_s23 + $0x15] sm:$0x1] %vm658_vm10, %v970_v18  ;;  %v1574_v26 = vcombine.high %v1569_v24, %v1569_v24  ;;  %v1581_v27 = vrot.slane %v1569_v24, %v2633_v11 }
 0x53b   : > { %989 = vst.msk [vmem:[%s2641_s23 + $0x19] sm:$0x1] %vm658_vm10, %v972_v19  ;;  %v1266_v28 = vcombine.high %v1264_v21, %v1264_v21  ;;  %v1280_v29 = vrot.slane %v1264_v21, %v2633_v11  ;;  %v1287_v30 = vrot.slane %v1265_v23, %v2633_v11  ;;  %v1295_v37 = vcombine.high %v1273_v4, %v1273_v4  ;;  %v1893_v56 = vpop.f32.mrf.mxu0 }
 0x53c   : > { %1307 = vst.msk [vmem:[%s2641_s23 + $0x2] sm:$0x1] %vm658_vm10, %v1273_v4  ;;  %990 = vst.msk [vmem:[%s2641_s23 + $0x1d] sm:$0x1] %vm658_vm10, %v974_v25  ;;  %v1588_v31 = vrot.slane %v1574_v26, %v2633_v11  ;;  %v1589_v32 = vcombine.high %v1581_v27, %v1581_v27  ;;  %v1597_v34 = vrot.slane %v1581_v27, %v2633_v11 }
 0x53d   : > { %v1294_v36 = vrot.slane %v1266_v28, %v2633_v11  ;;  %v1296_v38 = vcombine.high %v1280_v29, %v1280_v29  ;;  %v1297_v39 = vcombine.high %v1287_v30, %v1287_v30  ;;  %1308 = vst.msk [vmem:[%s2641_s23 + $0x6] sm:$0x1] %vm658_vm10, %v1287_v30  ;;  %1309 = vst.msk [vmem:[%s2641_s23 + $0xa] sm:$0x1] %vm658_vm10, %v1295_v37 }
 0x53e   : > { %1311 = vst.msk [vmem:[%s2641_s23 + $0x12] sm:$0x1] %vm658_vm10, %v1280_v29  ;;  %v1590_v52 = vcombine.high %v1588_v31, %v1588_v31  ;;  %v1604_v7 = vrot.slane %v1588_v31, %v2633_v11  ;;  %v1611_v40 = vrot.slane %v1589_v32, %v2633_v11  ;;  %v1619_v41 = vcombine.high %v1597_v34, %v1597_v34 }
 0x53f   : > { %1631 = vst.msk [vmem:[%s2641_s23 + $0x3] sm:$0x1] %vm658_vm10, %v1597_v34  ;;  %v1298_v42 = vcombine.high %v1294_v36, %v1294_v36  ;;  %1310 = vst.msk [vmem:[%s2641_s23 + $0xe] sm:$0x1] %vm658_vm10, %v1297_v39 }
 0x540   : > { %1312 = vst.msk [vmem:[%s2641_s23 + $0x16] sm:$0x1] %vm658_vm10, %v1294_v36  ;;  %1313 = vst.msk [vmem:[%s2641_s23 + $0x1a] sm:$0x1] %vm658_vm10, %v1296_v38  ;;  %v1618_v35 = vrot.slane %v1590_v52, %v2633_v11  ;;  %v1620_v43 = vcombine.high %v1604_v7, %v1604_v7  ;;  %v1621_v46 = vcombine.high %v1611_v40, %v1611_v40 }
 0x541   : > { %1632 = vst.msk [vmem:[%s2641_s23 + $0x7] sm:$0x1] %vm658_vm10, %v1611_v40  ;;  %1633 = vst.msk [vmem:[%s2641_s23 + $0xb] sm:$0x1] %vm658_vm10, %v1619_v41 }
 0x542   : > { %1635 = vst.msk [vmem:[%s2641_s23 + $0x13] sm:$0x1] %vm658_vm10, %v1604_v7  ;;  %1314 = vst.msk [vmem:[%s2641_s23 + $0x1e] sm:$0x1] %vm658_vm10, %v1298_v42  ;;  %v1622_v11 = vcombine.high %v1618_v35, %v1618_v35 }
 0x543   : > { %1634 = vst.msk [vmem:[%s2641_s23 + $0xf] sm:$0x1] %vm658_vm10, %v1621_v46  ;;  %1636 = vst.msk [vmem:[%s2641_s23 + $0x17] sm:$0x1] %vm658_vm10, %v1618_v35 }
 0x544   : > { %1637 = vst.msk [vmem:[%s2641_s23 + $0x1b] sm:$0x1] %vm658_vm10, %v1620_v43  ;;  %1638 = vst.msk [vmem:[%s2641_s23 + $0x1f] sm:$0x1] %vm658_vm10, %v1622_v11 }
 0x545   : > { %2123 = shalt.err (!%p2120_p6)
}
 0x546   : > { %s2124_s22 = scalar_lea.hbm %s2798_s1, 512  ;;  %s2128_s26 = scalar_lea.hbm %s2860_s4, 1024 }
 0x547   : > { %p2125_p9 = scmp.ne.s32.totalorder %s2798_s1, %s2124_s22  ;;  %p2129_p13 = scmp.lt.s32.totalorder %s2798_s1, %s2860_s4 }
 0x548   : > { %p2130_p7 = scmp.lt.s32.totalorder %s2128_s26, %s2124_s22 }
 0x549   : > { %p2126_p3 = pnand %p2125_p9, %p2333_p12 }
 0x54a   : > { %p2131_p2 = por %p2130_p7, %p2129_p13 }
 0x54b   : > { %p2127_p4 = pneg %p2126_p3 }
 0x54d   : > { %p2132_p11 = pnand %p2131_p2, %p2127_p4 }
 0x54f   : > { %2135 = shalt.err (!%p2132_p11)
}
 0x550   : > { %s2210_s9 = smov 64   ;;  %s2211_s7 = smov 4  }
 0x551   : > { %1904 = dma.vmem_to_hbm [thread:$0]  (%p2333_p12), %s2800_s29, 512, %s2798_s1, %s1640_s14, %s2210_s9, %s2210_s9, %s2211_s7  }
 0x552 PF: > { %s1670_s12 = sand.u32 1, %s2178_s15   ;;  %p2886_p10 = scmp.ne.s32.totalorder %s2877_s6, 0 }
 0x553   : > { %p2887_p0 = scmp.ge.s32.totalorder %s2198_s20, 2  ;;  %s1671_s23 = scalar_lea.sflag [#allocation4], %s1670_s12 }
 0x555   : > { %p1921_p8 = pnand %p2887_p0, %p2886_p10 }
 0x557   : > { %p1922_p5 = pneg %p1921_p8 }
 0x559   : > { %2173 = dma.done.wait (%p1922_p5), %s1671_s23, 512  }
 0x55a   : > { %2175 = vsyncadd (%p1922_p5), %s1671_s23, 4294966784  ;;  %s24_s20 = sadd.s32 1, %s2198_s20   ;;  %s2888_s18 = sld [smem:[#allocation15_spill]] }
 0x55b   : > { %p21_p1 = scmp.ge.s32.totalorder %s24_s20, 4   ;;  %s2889_s19 = sld [smem:[#allocation16_spill]] }
 0x55c   : > { %s2890_s15 = smov %s2182_s16  ;;  %s2891_s16 = smov %s2186_s17 }
 0x55d   : > { %s2892_s17 = smov %s2294_s28  ;;  %23 = sbr.rel (!%p21_p1) target bundleno = 12 (0xc), region = 110 }
 0x562   :  { %1676 = vsyncpa [#allocation3], 1 }
 0x563   :  { %1678 = vsyncpa [#allocation3 + $0x1], 1 }
 0x564   :  { %1679 = vsyncpa [#allocation6], 1 }
 0x565   :  { %1681 = vsyncpa [#allocation6 + $0x1], 1 }
 0x566   :  { %1682 = vsyncpa [#allocation9], 1 }
 0x567   :  { %1683 = vsyncpa [#allocation4], 1 }
 0x568   :  { %1685 = vsyncpa [#allocation4 + $0x1], 1 }

</bundles_post_ra>
